<compile_context>
chip_gen: v7x
topology: tpu7x:2x2x1
jax: 0.10.0
libtpu: 0.0.40
codegen_flags: <defaults>
</compile_context>

<pallas_src>
import functools

import jax
import jax.numpy as jnp
import numpy as np
from jax import lax
from jax.experimental import pallas as pl
from jax.experimental.pallas import tpu as pltpu

EPS = 1e-5  # PyTorch BatchNorm2d default


# ---------------------------------------------------------------------------
# Kernel
# ---------------------------------------------------------------------------
def _conv3x3_band(x3d, w_ref):
    """3x3 'same' conv as 3 banded matmuls (one per ky), lane-packed output.

    x3d   : (N, H, W*Cin) values in the MXU dtype (bf16 or f32).
    w_ref : (3, W*Cin, W*Cout) banded weight ref,
            w[ky, wi*Cin+ci, wo*Cout+co] = K[ky, wi-wo+1, ci, co] (0 outside band),
            i.e. the kx taps live in the contraction dim and the W padding is
            implicit in the band clipping.
    Returns (N*H, W*Cout) float32 accumulator.
    """
    N, H, K = x3d.shape
    zrow = jnp.zeros((N, 1, K), x3d.dtype)
    up = jnp.concatenate([zrow, x3d[:, : H - 1, :]], axis=1)  # input row h-1 (ky=0)
    dn = jnp.concatenate([x3d[:, 1:, :], zrow], axis=1)       # input row h+1 (ky=2)
    # accumulator initialised from the first tap (no zeros + add)
    acc = jnp.dot(up.reshape(N * H, K), w_ref[0], preferred_element_type=jnp.float32)
    acc += jnp.dot(x3d.reshape(N * H, K), w_ref[1], preferred_element_type=jnp.float32)
    acc += jnp.dot(dn.reshape(N * H, K), w_ref[2], preferred_element_type=jnp.float32)
    return acc


def _bias_relu_bn(acc, p, csum, inv_n):
    """bias + ReLU + training-mode BatchNorm2d, all in the lane-packed layout.

    acc  : (N*H, W*Cout) f32 conv accumulator.
    p    : (3, W*Cout) f32 -- rows = conv bias / BN gamma / BN beta, already
           tiled across the W lane groups by the wrapper (one-time jnp.tile).
    csum : (W*Cout, W*Cout) f32 with csum[i,j] = (i % Cout == j % Cout); one
           skinny f32 matmul turns per-lane sums into per-channel sums already
           broadcast back across the packed lanes.
    """
    a = jnp.maximum(acc + p[0:1, :], 0.0)                      # bias + ReLU
    s = jnp.dot(jnp.sum(a, axis=0, keepdims=True), csum,
                preferred_element_type=jnp.float32)            # (1, L) channel sums
    ss = jnp.dot(jnp.sum(a * a, axis=0, keepdims=True), csum,
                 preferred_element_type=jnp.float32)           # (1, L) channel sumsq
    mean = s * inv_n
    # TODO(synk): single-pass E[x^2]-mean^2 in f32 is fine at these scales; switch
    # to a two-pass / Welford formulation when this becomes a gridded kernel.
    var = jnp.maximum(ss * inv_n - mean * mean, 0.0)
    scale = p[1:2, :] * lax.rsqrt(var + EPS)
    shift = p[2:3, :] - mean * scale
    return a * scale + shift                                   # 2 full-tensor VPU ops


def _unet_block_kernel(x_ref, w1_ref, p1_ref, w2_ref, p2_ref, csum_ref, o_ref,
                       *, width):
    # x_ref   : (N, H, W*Cin)         lane-packed input (MXU dtype)
    # w*_ref  : (3, W*Cin_l, W*Cout)  banded conv weights (MXU dtype)
    # p*_ref  : (3, W*Cout)           f32 [bias; gamma; beta], pre-tiled over W
    # csum_ref: (W*Cout, W*Cout)      f32 channel-sum matrix
    # o_ref   : (N*H, W*Cout)         f32 lane-dense output (unmasked vst)
    N, H, _ = x_ref.shape
    L = o_ref.shape[-1]
    inv_n = 1.0 / (N * H * width)        # per-channel BatchNorm element count
    csum = csum_ref[...]

    # ---- layer 1: conv3x3 + bias + ReLU + BN (f32 epilogue) ----------------
    y1 = _bias_relu_bn(_conv3x3_band(x_ref[...], w1_ref), p1_ref[...], csum, inv_n)

    # ---- layer 2: same, consuming the VMEM-resident intermediate -----------
    y1m = y1.astype(w2_ref.dtype).reshape(N, H, L)     # cast to MXU operand dtype
    y2 = _bias_relu_bn(_conv3x3_band(y1m, w2_ref), p2_ref[...], csum, inv_n)

    o_ref[...] = y2                                    # full-width lane-dense store


# ---------------------------------------------------------------------------
# Wrapper-side packing (done once per call; in practice done once at load time)
# ---------------------------------------------------------------------------
def _band_weights(w_oihw, W):
    """PyTorch OIHW 3x3 weights -> (3, W*Cin, W*Cout) banded block-Toeplitz f32."""
    w = jnp.transpose(w_oihw, (2, 3, 1, 0)).astype(jnp.float32)   # (ky, kx, ci, co)
    off = np.arange(W)[:, None] - np.arange(W)[None, :] + 1        # wi - wo + 1
    valid = ((off >= 0) & (off <= 2)).astype(np.float32)
    kx = np.clip(off, 0, 2)
    band = w[:, kx, :, :] * valid[None, :, :, None, None]          # (3, W, W, Cin, Cout)
    band = jnp.transpose(band, (0, 1, 3, 2, 4))                    # (ky, wi, ci, wo, co)
    Cin, Cout = w.shape[2], w.shape[3]
    return band.reshape(3, W * Cin, W * Cout)


def _pack_affine(bias, gamma, beta, W):
    """(Cout,) params -> (3, W*Cout) f32, tiled once across the W lane groups."""
    tile = lambda v: jnp.tile(v.reshape(1, -1).astype(jnp.float32), (1, W))
    return jnp.concatenate([tile(bias), tile(gamma), tile(beta)], axis=0)


def _channel_sum_matrix(L, Cout):
    lane = np.arange(L)
    return jnp.asarray((lane[:, None] % Cout) == (lane[None, :] % Cout), jnp.float32)


def _vmem_limit_bytes():
    cap = 128 * 1024 * 1024
    try:
        cap = int(pltpu.get_tpu_info().vmem_capacity_bytes)  # 64 MiB/TC on v7x
    except Exception:
        pass
    return min(64 * 1024 * 1024, (3 * cap) // 4)


@functools.partial(jax.jit, static_argnames=("mxu_dtype",))
def unet_conv_block(x_nchw, params, mxu_dtype=jnp.bfloat16):
    """Forward of UNetConvBlock(in_size, out_size, padding=True, batch_norm=True)."""
    N, Cin, H, W = x_nchw.shape
    Cout = params["w1"].shape[0]
    L = W * Cout

    # NCHW -> lane-packed (N, H, W*Cin); matmul operands in bf16, f32 accumulate.
    # TODO(synk): at real sizes keep activations NHWC end-to-end so this transpose
    # (an extra HBM pass) disappears.
    x = jnp.transpose(x_nchw, (0, 2, 3, 1)).reshape(N, H, W * Cin).astype(mxu_dtype)

    w1 = _band_weights(params["w1"], W).astype(mxu_dtype)     # (3, W*Cin,  W*Cout)
    w2 = _band_weights(params["w2"], W).astype(mxu_dtype)     # (3, W*Cout, W*Cout)
    p1 = _pack_affine(params["b1"], params["g1"], params["beta1"], W)
    p2 = _pack_affine(params["b2"], params["g2"], params["beta2"], W)
    csum = _channel_sum_matrix(L, Cout)

    itm = jnp.dtype(mxu_dtype).itemsize
    flops = 2 * N * H * W * 9 * (Cin * Cout + Cout * Cout)
    bytes_accessed = (N * H * W * Cin * itm + 3 * (W * Cin) * L * itm
                      + 3 * L * L * itm + 2 * 3 * L * 4 + L * L * 4 + N * H * L * 4)

    out_flat = pl.pallas_call(
        functools.partial(_unet_block_kernel, width=W),
        out_shape=jax.ShapeDtypeStruct((N * H, L), jnp.float32),
        in_specs=[pl.BlockSpec(memory_space=pltpu.MemorySpace.VMEM)] * 6,
        out_specs=pl.BlockSpec(memory_space=pltpu.MemorySpace.VMEM),
        compiler_params=pltpu.CompilerParams(vmem_limit_bytes=_vmem_limit_bytes()),
        cost_estimate=pl.CostEstimate(flops=flops, transcendentals=2 * L,
                                      bytes_accessed=bytes_accessed),
    )(x, w1, p1, w2, p2, csum)

    out = out_flat.reshape(N, H, W, Cout)
    return jnp.transpose(out, (0, 3, 1, 2))                  # NHWC -> NCHW


# ---------------------------------------------------------------------------
# Pure-JAX (XLA) reference matching the PyTorch forward
# ---------------------------------------------------------------------------
def _reference(x_nchw, p):
    def conv(x, w_oihw, b):
        y = lax.conv_general_dilated(
            x, w_oihw, window_strides=(1, 1), padding=((1, 1), (1, 1)),
            dimension_numbers=("NCHW", "OIHW", "NCHW"))
        return y + b[None, :, None, None]

    def bn(x, g, bta):
        m = x.mean(axis=(0, 2, 3), keepdims=True)
        v = ((x - m) ** 2).mean(axis=(0, 2, 3), keepdims=True)
        return (x - m) * lax.rsqrt(v + EPS) * g[None, :, None, None] \
            + bta[None, :, None, None]

    y = bn(jnp.maximum(conv(x_nchw, p["w1"], p["b1"]), 0.0), p["g1"], p["beta1"])
    y = bn(jnp.maximum(conv(y, p["w2"], p["b2"]), 0.0), p["g2"], p["beta2"])
    return y


if __name__ == "__main__":
    # small shapes consistent with the module: in_size=4, out_size=8
    N, Cin, Cout, H, W = 2, 4, 8, 16, 16

    key = jax.random.PRNGKey(0)
    k1, k2, k3, k4, kx = jax.random.split(key, 5)

    params = {
        "w1": 0.1 * jax.random.normal(k1, (Cout, Cin, 3, 3), jnp.float32),
        "b1": 0.1 * jax.random.normal(k2, (Cout,), jnp.float32),
        "g1": jnp.ones((Cout,), jnp.float32),      # BatchNorm default init
        "beta1": jnp.zeros((Cout,), jnp.float32),
        "w2": 0.1 * jax.random.normal(k3, (Cout, Cout, 3, 3), jnp.float32),
        "b2": 0.1 * jax.random.normal(k4, (Cout,), jnp.float32),
        "g2": jnp.ones((Cout,), jnp.float32),
        "beta2": jnp.zeros((Cout,), jnp.float32),
    }

    x = jax.random.normal(kx, (N, Cin, H, W), jnp.float32)

    ref = jax.block_until_ready(_reference(x, params))

    # f32 MXU-operand mode: numerics validation.
    out_f32 = jax.block_until_ready(unet_conv_block(x, params, mxu_dtype=jnp.float32))
    assert out_f32.shape == (N, Cout, H, W), out_f32.shape
    np.testing.assert_allclose(np.asarray(out_f32), np.asarray(ref),
                               atol=1e-2, rtol=1e-2)

    # bf16 MXU-operand mode (default performance path on v5e/v6e/v7x); looser
    # tolerance reflects bf16 rounding through two conv layers (accumulation and
    # the ReLU/BatchNorm epilogue stay in f32).
    out_bf16 = jax.block_until_ready(unet_conv_block(x, params))
    assert out_bf16.shape == (N, Cout, H, W), out_bf16.shape
    np.testing.assert_allclose(np.asarray(out_bf16), np.asarray(ref),
                               atol=5e-2, rtol=5e-2)

    print("KERNEL_OK")
</pallas_src>

<mosaic_0001>
module attributes {stable_mosaic.version = 11 : i64} {
  func.func @_unet_block_kernel(%arg0: memref<2x16x64xf32, #tpu.memory_space<vmem>>, %arg1: memref<3x64x128xf32, #tpu.memory_space<vmem>>, %arg2: memref<3x128xf32, #tpu.memory_space<vmem>>, %arg3: memref<3x128x128xf32, #tpu.memory_space<vmem>>, %arg4: memref<3x128xf32, #tpu.memory_space<vmem>>, %arg5: memref<128x128xf32, #tpu.memory_space<vmem>>, %arg6: memref<32x128xf32, #tpu.memory_space<vmem>>) attributes {dimension_semantics = [], scalar_prefetch = 0 : i64, scratch_operands = 0 : i64, tpu.core_type = #tpu.core_type<tc>} {
    %c0 = arith.constant 0 : index
    %c0_0 = arith.constant 0 : index
    %0 = vector.load %arg5[%c0, %c0_0] : memref<128x128xf32, #tpu.memory_space<vmem>>, vector<128x128xf32>
    %c0_1 = arith.constant 0 : index
    %c0_2 = arith.constant 0 : index
    %c0_3 = arith.constant 0 : index
    %1 = vector.load %arg0[%c0_1, %c0_2, %c0_3] : memref<2x16x64xf32, #tpu.memory_space<vmem>>, vector<2x16x64xf32>
    %cst = arith.constant 0.000000e+00 : f32
    %2 = vector.broadcast %cst : f32 to vector<2x1x64xf32>
    %3 = vector.extract_strided_slice %1 {offsets = [0, 0, 0], sizes = [2, 15, 64], strides = [1, 1, 1]} : vector<2x16x64xf32> to vector<2x15x64xf32>
    %4 = tpu.concatenate %2, %3 in 1 : vector<2x1x64xf32>, vector<2x15x64xf32> -> vector<2x16x64xf32>
    %5 = vector.extract_strided_slice %1 {offsets = [0, 1, 0], sizes = [2, 15, 64], strides = [1, 1, 1]} : vector<2x16x64xf32> to vector<2x15x64xf32>
    %6 = tpu.concatenate %5, %2 in 1 : vector<2x15x64xf32>, vector<2x1x64xf32> -> vector<2x16x64xf32>
    %7 = vector.shape_cast %4 : vector<2x16x64xf32> to vector<32x64xf32>
    %c0_4 = arith.constant 0 : index
    %c0_5 = arith.constant 0 : index
    %c0_6 = arith.constant 0 : index
    %8 = vector.load %arg1[%c0_4, %c0_5, %c0_6] : memref<3x64x128xf32, #tpu.memory_space<vmem>>, vector<1x64x128xf32>
    %9 = vector.shape_cast %8 : vector<1x64x128xf32> to vector<64x128xf32>
    %cst_7 = arith.constant dense<0.000000e+00> : vector<32x128xf32>
    %10 = tpu.matmul %7, %9, %cst_7 {dimension_numbers = #tpu.dot_dimension_numbers<[1], [0], [0], [1], [0, 0, 1, 1], [], []>} : vector<32x64xf32>, vector<64x128xf32>, vector<32x128xf32> -> vector<32x128xf32>
    %11 = vector.shape_cast %1 : vector<2x16x64xf32> to vector<32x64xf32>
    %c1 = arith.constant 1 : index
    %c0_8 = arith.constant 0 : index
    %c0_9 = arith.constant 0 : index
    %12 = vector.load %arg1[%c1, %c0_8, %c0_9] : memref<3x64x128xf32, #tpu.memory_space<vmem>>, vector<1x64x128xf32>
    %13 = vector.shape_cast %12 : vector<1x64x128xf32> to vector<64x128xf32>
    %cst_10 = arith.constant dense<0.000000e+00> : vector<32x128xf32>
    %14 = tpu.matmul %11, %13, %cst_10 {dimension_numbers = #tpu.dot_dimension_numbers<[1], [0], [0], [1], [0, 0, 1, 1], [], []>} : vector<32x64xf32>, vector<64x128xf32>, vector<32x128xf32> -> vector<32x128xf32>
    %15 = arith.addf %10, %14 : vector<32x128xf32>
    %16 = vector.shape_cast %6 : vector<2x16x64xf32> to vector<32x64xf32>
    %c2 = arith.constant 2 : index
    %c0_11 = arith.constant 0 : index
    %c0_12 = arith.constant 0 : index
    %17 = vector.load %arg1[%c2, %c0_11, %c0_12] : memref<3x64x128xf32, #tpu.memory_space<vmem>>, vector<1x64x128xf32>
    %18 = vector.shape_cast %17 : vector<1x64x128xf32> to vector<64x128xf32>
    %cst_13 = arith.constant dense<0.000000e+00> : vector<32x128xf32>
    %19 = tpu.matmul %16, %18, %cst_13 {dimension_numbers = #tpu.dot_dimension_numbers<[1], [0], [0], [1], [0, 0, 1, 1], [], []>} : vector<32x64xf32>, vector<64x128xf32>, vector<32x128xf32> -> vector<32x128xf32>
    %20 = arith.addf %15, %19 : vector<32x128xf32>
    %c0_14 = arith.constant 0 : index
    %c0_15 = arith.constant 0 : index
    %21 = vector.load %arg2[%c0_14, %c0_15] : memref<3x128xf32, #tpu.memory_space<vmem>>, vector<3x128xf32>
    %22 = vector.extract_strided_slice %21 {offsets = [0, 0], sizes = [1, 128], strides = [1, 1]} : vector<3x128xf32> to vector<1x128xf32>
    %23 = vector.broadcast %22 : vector<1x128xf32> to vector<32x128xf32>
    %24 = arith.addf %20, %23 : vector<32x128xf32>
    %cst_16 = arith.constant 0.000000e+00 : f32
    %25 = vector.broadcast %cst_16 : f32 to vector<32x128xf32>
    %26 = arith.maximumf %24, %25 : vector<32x128xf32>
    %cst_17 = arith.constant dense<0.000000e+00> : vector<128xf32>
    %27 = vector.multi_reduction <add>, %26, %cst_17 [0] : vector<32x128xf32> to vector<128xf32>
    %28 = vector.shape_cast %27 : vector<128xf32> to vector<1x128xf32>
    %cst_18 = arith.constant dense<0.000000e+00> : vector<1x128xf32>
    %29 = tpu.matmul %28, %0, %cst_18 {dimension_numbers = #tpu.dot_dimension_numbers<[1], [0], [0], [1], [0, 0, 1, 1], [], []>} : vector<1x128xf32>, vector<128x128xf32>, vector<1x128xf32> -> vector<1x128xf32>
    %30 = arith.mulf %26, %26 : vector<32x128xf32>
    %cst_19 = arith.constant dense<0.000000e+00> : vector<128xf32>
    %31 = vector.multi_reduction <add>, %30, %cst_19 [0] : vector<32x128xf32> to vector<128xf32>
    %32 = vector.shape_cast %31 : vector<128xf32> to vector<1x128xf32>
    %cst_20 = arith.constant dense<0.000000e+00> : vector<1x128xf32>
    %33 = tpu.matmul %32, %0, %cst_20 {dimension_numbers = #tpu.dot_dimension_numbers<[1], [0], [0], [1], [0, 0, 1, 1], [], []>} : vector<1x128xf32>, vector<128x128xf32>, vector<1x128xf32> -> vector<1x128xf32>
    %cst_21 = arith.constant 0.001953125 : f32
    %34 = vector.broadcast %cst_21 : f32 to vector<1x128xf32>
    %35 = arith.mulf %29, %34 : vector<1x128xf32>
    %cst_22 = arith.constant 0.001953125 : f32
    %36 = vector.broadcast %cst_22 : f32 to vector<1x128xf32>
    %37 = arith.mulf %33, %36 : vector<1x128xf32>
    %38 = arith.mulf %35, %35 : vector<1x128xf32>
    %39 = arith.subf %37, %38 : vector<1x128xf32>
    %cst_23 = arith.constant 0.000000e+00 : f32
    %40 = vector.broadcast %cst_23 : f32 to vector<1x128xf32>
    %41 = arith.maximumf %39, %40 : vector<1x128xf32>
    %42 = vector.extract_strided_slice %21 {offsets = [1, 0], sizes = [1, 128], strides = [1, 1]} : vector<3x128xf32> to vector<1x128xf32>
    %cst_24 = arith.constant 9.99999974E-6 : f32
    %43 = vector.broadcast %cst_24 : f32 to vector<1x128xf32>
    %44 = arith.addf %41, %43 : vector<1x128xf32>
    %45 = math.rsqrt %44 : vector<1x128xf32>
    %46 = arith.mulf %42, %45 : vector<1x128xf32>
    %47 = vector.extract_strided_slice %21 {offsets = [2, 0], sizes = [1, 128], strides = [1, 1]} : vector<3x128xf32> to vector<1x128xf32>
    %48 = arith.mulf %35, %46 : vector<1x128xf32>
    %49 = arith.subf %47, %48 : vector<1x128xf32>
    %50 = vector.broadcast %46 : vector<1x128xf32> to vector<32x128xf32>
    %51 = arith.mulf %26, %50 : vector<32x128xf32>
    %52 = vector.broadcast %49 : vector<1x128xf32> to vector<32x128xf32>
    %53 = arith.addf %51, %52 : vector<32x128xf32>
    %54 = vector.shape_cast %53 : vector<32x128xf32> to vector<2x16x128xf32>
    %cst_25 = arith.constant 0.000000e+00 : f32
    %55 = vector.broadcast %cst_25 : f32 to vector<2x1x128xf32>
    %56 = vector.extract_strided_slice %54 {offsets = [0, 0, 0], sizes = [2, 15, 128], strides = [1, 1, 1]} : vector<2x16x128xf32> to vector<2x15x128xf32>
    %57 = tpu.concatenate %55, %56 in 1 : vector<2x1x128xf32>, vector<2x15x128xf32> -> vector<2x16x128xf32>
    %58 = vector.extract_strided_slice %54 {offsets = [0, 1, 0], sizes = [2, 15, 128], strides = [1, 1, 1]} : vector<2x16x128xf32> to vector<2x15x128xf32>
    %59 = tpu.concatenate %58, %55 in 1 : vector<2x15x128xf32>, vector<2x1x128xf32> -> vector<2x16x128xf32>
    %60 = vector.shape_cast %57 : vector<2x16x128xf32> to vector<32x128xf32>
    %c0_26 = arith.constant 0 : index
    %c0_27 = arith.constant 0 : index
    %c0_28 = arith.constant 0 : index
    %61 = vector.load %arg3[%c0_26, %c0_27, %c0_28] : memref<3x128x128xf32, #tpu.memory_space<vmem>>, vector<1x128x128xf32>
    %62 = vector.shape_cast %61 : vector<1x128x128xf32> to vector<128x128xf32>
    %cst_29 = arith.constant dense<0.000000e+00> : vector<32x128xf32>
    %63 = tpu.matmul %60, %62, %cst_29 {dimension_numbers = #tpu.dot_dimension_numbers<[1], [0], [0], [1], [0, 0, 1, 1], [], []>} : vector<32x128xf32>, vector<128x128xf32>, vector<32x128xf32> -> vector<32x128xf32>
    %64 = vector.shape_cast %54 : vector<2x16x128xf32> to vector<32x128xf32>
    %c1_30 = arith.constant 1 : index
    %c0_31 = arith.constant 0 : index
    %c0_32 = arith.constant 0 : index
    %65 = vector.load %arg3[%c1_30, %c0_31, %c0_32] : memref<3x128x128xf32, #tpu.memory_space<vmem>>, vector<1x128x128xf32>
    %66 = vector.shape_cast %65 : vector<1x128x128xf32> to vector<128x128xf32>
    %cst_33 = arith.constant dense<0.000000e+00> : vector<32x128xf32>
    %67 = tpu.matmul %64, %66, %cst_33 {dimension_numbers = #tpu.dot_dimension_numbers<[1], [0], [0], [1], [0, 0, 1, 1], [], []>} : vector<32x128xf32>, vector<128x128xf32>, vector<32x128xf32> -> vector<32x128xf32>
    %68 = arith.addf %63, %67 : vector<32x128xf32>
    %69 = vector.shape_cast %59 : vector<2x16x128xf32> to vector<32x128xf32>
    %c2_34 = arith.constant 2 : index
    %c0_35 = arith.constant 0 : index
    %c0_36 = arith.constant 0 : index
    %70 = vector.load %arg3[%c2_34, %c0_35, %c0_36] : memref<3x128x128xf32, #tpu.memory_space<vmem>>, vector<1x128x128xf32>
    %71 = vector.shape_cast %70 : vector<1x128x128xf32> to vector<128x128xf32>
    %cst_37 = arith.constant dense<0.000000e+00> : vector<32x128xf32>
    %72 = tpu.matmul %69, %71, %cst_37 {dimension_numbers = #tpu.dot_dimension_numbers<[1], [0], [0], [1], [0, 0, 1, 1], [], []>} : vector<32x128xf32>, vector<128x128xf32>, vector<32x128xf32> -> vector<32x128xf32>
    %73 = arith.addf %68, %72 : vector<32x128xf32>
    %c0_38 = arith.constant 0 : index
    %c0_39 = arith.constant 0 : index
    %74 = vector.load %arg4[%c0_38, %c0_39] : memref<3x128xf32, #tpu.memory_space<vmem>>, vector<3x128xf32>
    %75 = vector.extract_strided_slice %74 {offsets = [0, 0], sizes = [1, 128], strides = [1, 1]} : vector<3x128xf32> to vector<1x128xf32>
    %76 = vector.broadcast %75 : vector<1x128xf32> to vector<32x128xf32>
    %77 = arith.addf %73, %76 : vector<32x128xf32>
    %cst_40 = arith.constant 0.000000e+00 : f32
    %78 = vector.broadcast %cst_40 : f32 to vector<32x128xf32>
    %79 = arith.maximumf %77, %78 : vector<32x128xf32>
    %cst_41 = arith.constant dense<0.000000e+00> : vector<128xf32>
    %80 = vector.multi_reduction <add>, %79, %cst_41 [0] : vector<32x128xf32> to vector<128xf32>
    %81 = vector.shape_cast %80 : vector<128xf32> to vector<1x128xf32>
    %cst_42 = arith.constant dense<0.000000e+00> : vector<1x128xf32>
    %82 = tpu.matmul %81, %0, %cst_42 {dimension_numbers = #tpu.dot_dimension_numbers<[1], [0], [0], [1], [0, 0, 1, 1], [], []>} : vector<1x128xf32>, vector<128x128xf32>, vector<1x128xf32> -> vector<1x128xf32>
    %83 = arith.mulf %79, %79 : vector<32x128xf32>
    %cst_43 = arith.constant dense<0.000000e+00> : vector<128xf32>
    %84 = vector.multi_reduction <add>, %83, %cst_43 [0] : vector<32x128xf32> to vector<128xf32>
    %85 = vector.shape_cast %84 : vector<128xf32> to vector<1x128xf32>
    %cst_44 = arith.constant dense<0.000000e+00> : vector<1x128xf32>
    %86 = tpu.matmul %85, %0, %cst_44 {dimension_numbers = #tpu.dot_dimension_numbers<[1], [0], [0], [1], [0, 0, 1, 1], [], []>} : vector<1x128xf32>, vector<128x128xf32>, vector<1x128xf32> -> vector<1x128xf32>
    %cst_45 = arith.constant 0.001953125 : f32
    %87 = vector.broadcast %cst_45 : f32 to vector<1x128xf32>
    %88 = arith.mulf %82, %87 : vector<1x128xf32>
    %cst_46 = arith.constant 0.001953125 : f32
    %89 = vector.broadcast %cst_46 : f32 to vector<1x128xf32>
    %90 = arith.mulf %86, %89 : vector<1x128xf32>
    %91 = arith.mulf %88, %88 : vector<1x128xf32>
    %92 = arith.subf %90, %91 : vector<1x128xf32>
    %cst_47 = arith.constant 0.000000e+00 : f32
    %93 = vector.broadcast %cst_47 : f32 to vector<1x128xf32>
    %94 = arith.maximumf %92, %93 : vector<1x128xf32>
    %95 = vector.extract_strided_slice %74 {offsets = [1, 0], sizes = [1, 128], strides = [1, 1]} : vector<3x128xf32> to vector<1x128xf32>
    %cst_48 = arith.constant 9.99999974E-6 : f32
    %96 = vector.broadcast %cst_48 : f32 to vector<1x128xf32>
    %97 = arith.addf %94, %96 : vector<1x128xf32>
    %98 = math.rsqrt %97 : vector<1x128xf32>
    %99 = arith.mulf %95, %98 : vector<1x128xf32>
    %100 = vector.extract_strided_slice %74 {offsets = [2, 0], sizes = [1, 128], strides = [1, 1]} : vector<3x128xf32> to vector<1x128xf32>
    %101 = arith.mulf %88, %99 : vector<1x128xf32>
    %102 = arith.subf %100, %101 : vector<1x128xf32>
    %103 = vector.broadcast %99 : vector<1x128xf32> to vector<32x128xf32>
    %104 = arith.mulf %79, %103 : vector<32x128xf32>
    %105 = vector.broadcast %102 : vector<1x128xf32> to vector<32x128xf32>
    %106 = arith.addf %104, %105 : vector<32x128xf32>
    %c0_49 = arith.constant 0 : index
    %c0_50 = arith.constant 0 : index
    %107 = vector.load %arg6[%c0_49, %c0_50] : memref<32x128xf32, #tpu.memory_space<vmem>>, vector<32x128xf32>
    tpu.vector_store %arg6[%c0_49, %c0_50], %106 {strides = array<i32>} : memref<32x128xf32, #tpu.memory_space<vmem>>, vector<32x128xf32>,
    return
  }
}

</mosaic_0001>

<bundles_post_ra>
// kernel: unet_conv_block.1
= control target key start
LH: loop header
LB: loop body
LE: loop exit
PB: predicated region body
PF: predicated region fallthrough
CT: control target
= control target key end

     0   :  { %11 = vsyncpa [#allocation3], 0  ;;  %s2570_s0 = inlined_call_operand.hbm [shape: f32[2,16,64], index: 0, kind: input, shape index: {}]   ;;  %s2571_s1 = inlined_call_operand.hbm [shape: f32[3,64,128], index: 1, kind: input, shape index: {}]   ;;  %s2572_s2 = inlined_call_operand.hbm [shape: f32[3,128], index: 2, kind: input, shape index: {}]   ;;  %s2573_s3 = inlined_call_operand.hbm [shape: f32[3,128,128], index: 3, kind: input, shape index: {}]   ;;  %s2574_s4 = inlined_call_operand.hbm [shape: f32[3,128], index: 4, kind: input, shape index: {}]   ;;  %s2575_s5 = inlined_call_operand.hbm [shape: f32[128,128], index: 5, kind: input, shape index: {}]   ;;  %s2576_s6 = inlined_call_operand.hbm [shape: f32[32,128], index: 6, kind: output, shape index: {}]  }
   0x1   :  { %12 = vsyncpa [#allocation6], 0 }
   0x2   :  { %13 = vsyncpa [#allocation9], 0 }
   0x3   :  { %14 = vsyncpa [#allocation12], 0 }
   0x4   :  { %15 = vsyncpa [#allocation4], 0  ;;  %s2181_s21 = smov [#allocation5]   ;;  %s2182_s23 = smov [#allocation8]  }
   0x5   :  { %s33_s22 = sshll.u32 %s2181_s21, 4  ;;  %s55_s24 = sshll.u32 %s2182_s23, 4  ;;  %s34_s22 = int_to_ptr.vmem [resolvable:$true] %s33_s22  ;;  %s2228_s24 = int_to_ptr.vmem [resolvable:$true] %s55_s24 }
   0x6   :  { %s2017_s27 = scalar_lea.hbm %s2571_s1, 3072 }
   0x7   :  { %p2018_p0 = scmp.ne.s32.totalorder %s2571_s1, %s2017_s27  ;;  %p2021_p1 = scmp.lt.u32.totalorder %s2017_s27, %s2571_s1 }
   0x9   :  { %p2023_p2 = pnand %p2021_p1, %p2018_p0 }
   0xb   :  { %2026 = shalt.err (!%p2023_p2)
}
   0xc   :  { %s2027_s8 = scalar_lea.vmem %s34_s22, 3072  ;;  %p2032_p4 = scmp.lt.s32.totalorder %s34_s22, %s34_s22 }
   0xd   :  { %p2028_p3 = scmp.ne.s32.totalorder %s34_s22, %s2027_s8  ;;  %p2033_p5 = scmp.lt.s32.totalorder %s2027_s8, %s2027_s8 }
   0xf   :  { %p2034_p6 = por %p2033_p5, %p2032_p4 }
  0x11   :  { %p2035_p7 = pnand %p2034_p6, %p2028_p3 }
  0x13   :  { %2038 = shalt.err (!%p2035_p7)
}
  0x14   :  { %s2183_s9 = smov 128   ;;  %s2184_s10 = smov 8  }
  0x15   :  { %39 = dma.hbm_to_vmem [thread:$0]  %s2571_s1, 3072, %s34_s22, [#allocation6], %s2183_s9, %s2183_s9, %s2184_s10  }
  0x16   :  { %s2039_s15 = scalar_lea.hbm %s2573_s3, 6144 }
  0x17   :  { %p2040_p8 = scmp.ne.s32.totalorder %s2573_s3, %s2039_s15  ;;  %p2043_p9 = scmp.lt.u32.totalorder %s2039_s15, %s2573_s3 }
  0x19   :  { %p2045_p10 = pnand %p2043_p9, %p2040_p8 }
  0x1b   :  { %2048 = shalt.err (!%p2045_p10)
}
  0x1c   :  { %s2049_s20 = scalar_lea.vmem %s2228_s24, 6144  ;;  %p2054_p12 = scmp.lt.s32.totalorder %s2228_s24, %s2228_s24 }
  0x1d   :  { %p2050_p11 = scmp.ne.s32.totalorder %s2228_s24, %s2049_s20  ;;  %p2055_p13 = scmp.lt.s32.totalorder %s2049_s20, %s2049_s20 }
  0x1f   :  { %p2056_p0 = por %p2055_p13, %p2054_p12 }
  0x21   :  { %p2057_p1 = pnand %p2056_p0, %p2050_p11 }
  0x23   :  { %2060 = shalt.err (!%p2057_p1)
}
  0x24   :  { %61 = dma.hbm_to_vmem [thread:$0]  %s2573_s3, 6144, %s2228_s24, [#allocation9], %s2183_s9, %s2183_s9, %s2184_s10  }
  0x25   :  { %s2185_s22 = smov [#allocation2]   ;;  %s2186_s25 = smov [#allocation7]  }
  0x26   :  { %s21_s23 = sshll.u32 %s2185_s22, 4  ;;  %s46_s26 = sshll.u32 %s2186_s25, 4  ;;  %s22_s23 = int_to_ptr.vmem [resolvable:$true] %s21_s23  ;;  %s47_s26 = int_to_ptr.vmem [resolvable:$true] %s46_s26 }
  0x27   :  { %s2061_s29 = scalar_lea.hbm %s2570_s0, 512 }
  0x28   :  { %p2062_p2 = scmp.ne.s32.totalorder %s2570_s0, %s2061_s29  ;;  %p2065_p3 = scmp.lt.u32.totalorder %s2061_s29, %s2570_s0 }
  0x2a   :  { %p2067_p4 = pnand %p2065_p3, %p2062_p2 }
  0x2c   :  { %2070 = shalt.err (!%p2067_p4)
}
  0x2d   :  { %s2071_s3 = scalar_lea.vmem %s22_s23, 512  ;;  %p2076_p6 = scmp.lt.s32.totalorder %s22_s23, %s22_s23 }
  0x2e   :  { %p2072_p5 = scmp.ne.s32.totalorder %s22_s23, %s2071_s3  ;;  %p2077_p7 = scmp.lt.s32.totalorder %s2071_s3, %s2071_s3 }
  0x30   :  { %p2078_p8 = por %p2077_p7, %p2076_p6 }
  0x32   :  { %p2079_p9 = pnand %p2078_p8, %p2072_p5 }
  0x34   :  { %2082 = shalt.err (!%p2079_p9)
}
  0x35   :  { %27 = dma.hbm_to_vmem [thread:$0]  %s2570_s0, 512, %s22_s23, [#allocation3], %s2183_s9, %s2183_s9, %s2184_s10  }
  0x36   :  { %s2083_s15 = scalar_lea.hbm %s2572_s2, 64 }
  0x37   :  { %p2084_p10 = scmp.ne.s32.totalorder %s2572_s2, %s2083_s15  ;;  %p2087_p11 = scmp.lt.u32.totalorder %s2083_s15, %s2572_s2 }
  0x39   :  { %p2089_p12 = pnand %p2087_p11, %p2084_p10 }
  0x3b   :  { %2092 = shalt.err (!%p2089_p12)
}
  0x3c   :  { %s2093_s20 = scalar_lea.vmem %s47_s26, 64  ;;  %p2098_p0 = scmp.lt.s32.totalorder %s47_s26, %s47_s26 }
  0x3d   :  { %p2094_p13 = scmp.ne.s32.totalorder %s47_s26, %s2093_s20  ;;  %p2099_p1 = scmp.lt.s32.totalorder %s2093_s20, %s2093_s20 }
  0x3f   :  { %p2100_p2 = por %p2099_p1, %p2098_p0 }
  0x41   :  { %p2101_p3 = pnand %p2100_p2, %p2094_p13 }
  0x43   :  { %2104 = shalt.err (!%p2101_p3)
}
  0x44   :  { %49 = dma.hbm_to_vmem [thread:$0]  %s2572_s2, 64, %s47_s26, [#allocation6]  }
  0x45   :  { %s2187_s21 = smov [#allocation10]   ;;  %s2188_s23 = smov [#allocation11]  }
  0x46   :  { %s68_s22 = sshll.u32 %s2187_s21, 4  ;;  %s77_s25 = sshll.u32 %s2188_s23, 4  ;;  %s69_s22 = int_to_ptr.vmem [resolvable:$true] %s68_s22  ;;  %s2292_s25 = int_to_ptr.vmem [resolvable:$true] %s77_s25 }
  0x47   :  { %s2105_s29 = scalar_lea.hbm %s2574_s4, 64 }
  0x48   :  { %p2106_p4 = scmp.ne.s32.totalorder %s2574_s4, %s2105_s29  ;;  %p2109_p5 = scmp.lt.u32.totalorder %s2105_s29, %s2574_s4 }
  0x4a   :  { %p2111_p6 = pnand %p2109_p5, %p2106_p4 }
  0x4c   :  { %2114 = shalt.err (!%p2111_p6)
}
  0x4d   :  { %s2115_s2 = scalar_lea.vmem %s69_s22, 64  ;;  %p2120_p8 = scmp.lt.s32.totalorder %s69_s22, %s69_s22 }
  0x4e   :  { %p2116_p7 = scmp.ne.s32.totalorder %s69_s22, %s2115_s2  ;;  %p2121_p9 = scmp.lt.s32.totalorder %s2115_s2, %s2115_s2 }
  0x50   :  { %p2122_p10 = por %p2121_p9, %p2120_p8 }
  0x52   :  { %p2123_p11 = pnand %p2122_p10, %p2116_p7 }
  0x54   :  { %2126 = shalt.err (!%p2123_p11)
}
  0x55   :  { %71 = dma.hbm_to_vmem [thread:$0]  %s2574_s4, 64, %s69_s22, [#allocation9]  }
  0x56   :  { %s2127_s13 = scalar_lea.hbm %s2575_s5, 2048 }
  0x57   :  { %p2128_p12 = scmp.ne.s32.totalorder %s2575_s5, %s2127_s13  ;;  %p2131_p13 = scmp.lt.u32.totalorder %s2127_s13, %s2575_s5 }
  0x59   :  { %p2133_p0 = pnand %p2131_p13, %p2128_p12 }
  0x5b   :  { %2136 = shalt.err (!%p2133_p0)
}
  0x5c   :  { %s2137_s18 = scalar_lea.vmem %s2292_s25, 2048  ;;  %p2142_p2 = scmp.lt.s32.totalorder %s2292_s25, %s2292_s25 }
  0x5d   :  { %p2138_p1 = scmp.ne.s32.totalorder %s2292_s25, %s2137_s18  ;;  %p2143_p3 = scmp.lt.s32.totalorder %s2137_s18, %s2137_s18 }
  0x5f   :  { %p2144_p4 = por %p2143_p3, %p2142_p2 }
  0x61   :  { %p2145_p5 = pnand %p2144_p4, %p2138_p1 }
  0x63   :  { %2148 = shalt.err (!%p2145_p5)
}
  0x64   :  { %83 = dma.hbm_to_vmem [thread:$0]  %s2575_s5, 2048, %s2292_s25, [#allocation12], %s2183_s9, %s2183_s9, %s2184_s10  }
  0x65   :  { %2171 = dma.done.wait [#allocation3], 512  }
  0x66   :  { %2172 = vsyncadd [#allocation3], 4294966784 }
  0x67   :  { %2173 = dma.done.wait [#allocation6], 3136  }
  0x68   :  { %2174 = vsyncadd [#allocation6], 4294964160 }
  0x69   :  { %2175 = dma.done.wait [#allocation9], 6208  }
  0x6a   :  { %2176 = vsyncadd [#allocation9], 4294961088 }
  0x6b   :  { %2177 = dma.done.wait [#allocation12], 2048  }
  0x6c   :  { %2178 = vsyncadd [#allocation12], 4294965248  ;;  %v148_v0 = vld [vmem:[#allocation5] sm:$0xff]  ;;  %v149_v1 = vld [vmem:[#allocation5 + $0x8] sm:$0xff]  ;;  %vm126_vm0 = vcmask 1040384   ;;  %vm165_vm1 = vcmask 523264  }
  0x6d   :  { %v150_v2 = vld [vmem:[#allocation5 + $0x10] sm:$0xff]  ;;  %v1761_v3 = vpack.c.bf16 %v149_v1, %v148_v0  ;;  %v151_v4 = vld [vmem:[#allocation5 + $0x18] sm:$0xff]  ;;  %v152_v6 = vld [vmem:[#allocation5 + $0x20] sm:$0xff]  ;;  %vm137_vm2 = vcmask 1046528   ;;  %v2189_v50 = vmov 0.0|0.0   ;;  %vm2190_vm3 = vmmov 0  }
  0x6e   :  { %v1765_v5 = vpack.c.bf16 %v151_v4, %v150_v2  ;;  %v153_v7 = vld [vmem:[#allocation5 + $0x28] sm:$0xff]  ;;  %v157_v8 = vld [vmem:[#allocation5 + $0x40] sm:$0xff]  ;;  %v159_v13 = vld [vmem:[#allocation5 + $0x50] sm:$0xff]  ;;  %s2192_s5 = smov [#allocation13]  }
  0x6f   :  { %1762 = vmatprep.subr.bf16.mxu0 %v1761_v3  ;;  %v158_v9 = vld [vmem:[#allocation5 + $0x48] sm:$0xff]  ;;  %v2326_v10 = vld [vmem:[#allocation2] sm:$0xff]  ;;  %v1769_v14 = vpack.c.bf16 %v153_v7, %v152_v6  ;;  %v154_v15 = vld [vmem:[#allocation5 + $0x30] sm:$0xff]  ;;  %s1228_s20 = sshll.u32 %s2192_s5, 4  ;;  %s1229_s20 = int_to_ptr.vmem [resolvable:$true] %s1228_s20 }
  0x70   :  { %1764 = vmatpush3.bf16.msra.mxu0 %v1761_v3  ;;  %v1745_v11 = vpack.c.bf16 %v158_v9, %v157_v8  ;;  %v127_v12 = vrot.slane %v2326_v10, 7  ;;  %1441 = vmatprep.mubr.msk.f32.mxu1 %vm165_vm1, %v2326_v10  ;;  %v160_v16 = vld [vmem:[#allocation5 + $0x58] sm:$0xff]  ;;  %v161_v20 = vld [vmem:[#allocation5 + $0x60] sm:$0xff]  ;;  %v162_v21 = vld [vmem:[#allocation5 + $0x68] sm:$0xff]  ;;  %v138_v39 = vrot.slane %v2326_v10, 1  ;;  %s2149_s0 = scalar_lea.vmem %s1229_s20, 512  ;;  %p2154_p7 = scmp.lt.s32.totalorder %s1229_s20, %s1229_s20 }
  0x71   :  { %1766 = vmatprep.subr.bf16.mxu0 %v1765_v5  ;;  %v155_v17 = vld [vmem:[#allocation5 + $0x38] sm:$0xff]  ;;  %v1749_v19 = vpack.c.bf16 %v160_v16, %v159_v13  ;;  %v1753_v22 = vpack.c.bf16 %v162_v21, %v161_v20  ;;  %v119_v24 = vld [vmem:[#allocation2 + $0x8] sm:$0xff]  ;;  %v163_v25 = vld [vmem:[#allocation5 + $0x70] sm:$0xff]  ;;  %p2150_p6 = scmp.ne.s32.totalorder %s1229_s20, %s2149_s0  ;;  %p2155_p8 = scmp.lt.s32.totalorder %s2149_s0, %s2149_s0 }
  0x72   :  { %1746 = vmatprep.subr.bf16.mxu1 %v1745_v11  ;;  %v135_v18 = vsel %vm126_vm0, 0.0, %v127_v12  ;;  %v1773_v23 = vpack.c.bf16 %v155_v17, %v154_v15  ;;  %v164_v26 = vld [vmem:[#allocation5 + $0x78] sm:$0xff]  ;;  %v355_v27 = vld [vmem:[#allocation5 + $0x80] sm:$0xff]  ;;  %v356_v28 = vld [vmem:[#allocation5 + $0x88] sm:$0xff]  ;;  %v128_v30 = vrot.slane %v119_v24, 7  ;;  %v139_v43 = vrot.slane %v119_v24, 1 }
  0x73   :  { %1748 = vmatpush3.bf16.msra.mxu1 %v1745_v11  ;;  %1463 = vmatprep.mubr.msk.f32.mxu0 %vm165_vm1, %v135_v18  ;;  %v120_v29 = vld [vmem:[#allocation2 + $0x10] sm:$0xff]  ;;  %v1757_v31 = vpack.c.bf16 %v164_v26, %v163_v25  ;;  %v1777_v32 = vpack.c.bf16 %v356_v28, %v355_v27  ;;  %v121_v34 = vld [vmem:[#allocation2 + $0x18] sm:$0xff]  ;;  %v359_v41 = vld [vmem:[#allocation5 + $0xa0] sm:$0xff]  ;;  %v2191_v17 = vmov 0.0   ;;  %p2156_p9 = por %p2155_p8, %p2154_p7 }
  0x74   :  { %1768 = vmatpush3.bf16.msra.mxu0 %v1765_v5  ;;  %1750 = vmatprep.subr.bf16.mxu1 %v1749_v19  ;;  %v130_v33 = vrot.slane %v120_v29, 7  ;;  %v357_v35 = vld [vmem:[#allocation5 + $0x90] sm:$0xff]  ;;  %v358_v36 = vld [vmem:[#allocation5 + $0x98] sm:$0xff]  ;;  %v129_v37 = vsel %vm126_vm0, %v127_v12, %v128_v30  ;;  %v131_v38 = vrot.slane %v121_v34, 7  ;;  %v360_v44 = vld [vmem:[#allocation5 + $0xa8] sm:$0xff]  ;;  %v140_v49 = vsel %vm137_vm2, %v138_v39, %v139_v43 }
  0x75   :  { %1770 = vmatprep.subr.bf16.mxu0 %v1769_v14  ;;  %v1781_v40 = vpack.c.bf16 %v358_v36, %v357_v35  ;;  %v102_v45 = vld [vmem:[#allocation11] sm:$0xff]  ;;  %v103_v46 = vld [vmem:[#allocation11 + $0x8] sm:$0xff]  ;;  %v1785_v48 = vpack.c.bf16 %v360_v44, %v359_v41  ;;  %v362_v53 = vld [vmem:[#allocation5 + $0xb8] sm:$0xff]  ;;  %v141_v55 = vrot.slane %v120_v29, 1  ;;  %v142_v56 = vrot.slane %v121_v34, 1  ;;  %p2157_p10 = pnand %p2156_p9, %p2150_p6 }
  0x76   :  { %v136_v42 = vsel %vm126_vm0, 0.0, %v130_v33  ;;  %v132_v47 = vsel %vm126_vm0, %v130_v33, %v131_v38  ;;  %v2341_v51 = vpack.c.bf16 %v103_v46, %v102_v45  ;;  %v361_v52 = vld [vmem:[#allocation5 + $0xb0] sm:$0xff]  ;;  %v146_v57 = vsel %vm137_vm2, %v139_v43, 0.0  ;;  %v104_v60 = vld [vmem:[#allocation11 + $0x10] sm:$0xff]  ;;  %v105_v61 = vld [vmem:[#allocation11 + $0x18] sm:$0xff] }
  0x77   :  { %1752 = vmatpush3.bf16.msra.mxu1 %v1749_v19  ;;  %v1789_v54 = vpack.c.bf16 %v362_v53, %v361_v52  ;;  %v143_v58 = vsel %vm137_vm2, %v141_v55, %v142_v56  ;;  %v147_v59 = vsel %vm137_vm2, %v142_v56, 0.0  ;;  %v2356_v62 = vpack.c.bf16 %v105_v61, %v104_v60  ;;  %v106_v63 = vld [vmem:[#allocation11 + $0x20] sm:$0xff]  ;;  %v107_v0 = vld [vmem:[#allocation11 + $0x28] sm:$0xff]  ;;  %v108_v2 = vld [vmem:[#allocation11 + $0x30] sm:$0xff] }
  0x78   :  { %1772 = vmatpush3.bf16.msra.mxu0 %v1769_v14  ;;  %1754 = vmatprep.subr.bf16.mxu1 %v1753_v22  ;;  %v2360_v1 = vpack.c.bf16 %v107_v0, %v106_v63  ;;  %v109_v3 = vld [vmem:[#allocation11 + $0x38] sm:$0xff]  ;;  %v110_v5 = vld [vmem:[#allocation11 + $0x40] sm:$0xff]  ;;  %v111_v6 = vld [vmem:[#allocation11 + $0x48] sm:$0xff]  ;;  %v463_v19 = vlaneseq }
  0x79   :  { %1774 = vmatprep.subr.bf16.mxu0 %v1773_v23  ;;  %v2364_v4 = vpack.c.bf16 %v109_v3, %v108_v2  ;;  %v2368_v7 = vpack.c.bf16 %v111_v6, %v110_v5  ;;  %v112_v8 = vld [vmem:[#allocation11 + $0x50] sm:$0xff]  ;;  %v113_v9 = vld [vmem:[#allocation11 + $0x58] sm:$0xff]  ;;  %v114_v11 = vld [vmem:[#allocation11 + $0x60] sm:$0xff] }
  0x7a   :  { %v2372_v10 = vpack.c.bf16 %v113_v9, %v112_v8  ;;  %v115_v12 = vld [vmem:[#allocation11 + $0x68] sm:$0xff]  ;;  %v116_v14 = vld [vmem:[#allocation11 + $0x70] sm:$0xff]  ;;  %v117_v15 = vld [vmem:[#allocation11 + $0x78] sm:$0xff]  ;;  %v2386_v21 = vshrl.u32 %v463_v19, 7 }
  0x7b   :  { %1756 = vmatpush3.bf16.msra.mxu1 %v1753_v22  ;;  %v2376_v13 = vpack.c.bf16 %v115_v12, %v114_v11  ;;  %v2380_v16 = vpack.c.bf16 %v117_v15, %v116_v14  ;;  %v2389_v25 = vld [vmem:[#allocation7] sm:$0x7]  ;;  %v717_v6 = vld [vmem:[#allocation8 + $0x80] sm:$0xff]  ;;  %v718_v8 = vld [vmem:[#allocation8 + $0x88] sm:$0xff] }
  0x7c   :  { %1776 = vmatpush3.bf16.msra.mxu0 %v1773_v23  ;;  %1758 = vmatprep.subr.bf16.mxu1 %v1757_v31  ;;  %v1841_v9 = vpack.c.bf16 %v718_v8, %v717_v6  ;;  %v719_v11 = vld [vmem:[#allocation8 + $0x90] sm:$0xff]  ;;  %v720_v12 = vld [vmem:[#allocation8 + $0x98] sm:$0xff]  ;;  %v721_v15 = vld [vmem:[#allocation8 + $0xa0] sm:$0xff] }
  0x7d   :  { %1778 = vmatprep.subr.bf16.mxu0 %v1777_v32  ;;  %v1845_v14 = vpack.c.bf16 %v720_v12, %v719_v11  ;;  %v702_v12 = vld [vmem:[#allocation8 + $0x10] sm:$0xff]  ;;  %vm2479_vm4 = vmneg %vm126_vm0 }
  0x7f   :  { %1464 = vmatmul.mubr.msk.f32.vlgmr.msra.gmra.mrb[0].mxu0 %vm165_vm1, %v129_v37  ;;  %1760 = vmatpush3.bf16.msra.mxu1 %v1757_v31 }
  0x80   :  { %1780 = vmatpush3.bf16.msra.mxu0 %v1777_v32  ;;  %1466 = vmatprep.mubr.msk.f32.mxu0 %vm165_vm1, %v136_v42 }
  0x81   :  { %1782 = vmatprep.subr.bf16.mxu0 %v1781_v40  ;;  %1793 = vmatprep.subr.bf16.mxu1 %v2189_v50 }
  0x82   :  { %1442 = vmatmul.mubr.msk.f32.vlgmr.msra.gmra.mrb[0].mxu1 %vm165_vm1, %v119_v24  ;;  %v465_v24 = vsub.s32 0, %v2386_v21 }
  0x83   :  { %1467 = vmatmul.mubr.msk.f32.gmra.mrb[2].mxu0 %vm165_vm1, %v132_v47  ;;  %1444 = vmatprep.mubr.msk.f32.mxu1 %vm165_vm1, %v120_v29 }
  0x84   :  { %1784 = vmatpush3.bf16.msra.mxu0 %v1781_v40  ;;  %1485 = vmatprep.mubr.msk.f32.mxu0 %vm165_vm1, %v140_v49  ;;  %v466_v26 = vrot.slane %v2389_v25, %v465_v24 }
  0x85   :  { %1786 = vmatprep.subr.bf16.mxu0 %v1785_v48  ;;  %1795 = vmatpush3.bf16.msra.mxu1 %v2341_v51 }
  0x86   :  { %1445 = vmatmul.mubr.msk.f32.gmra.mrb[2].mxu1 %vm165_vm1, %v121_v34  ;;  %1796 = vmatprep.subr.bf16.mxu1 %v2189_v50 }
  0x87   :  { %1523 = vmatprep.mubr.msk.f32.mxu1 %vm2190_vm3, %v2191_v17 }
  0x88   :  { %1788 = vmatpush3.bf16.msra.mxu0 %v1785_v48 }
  0x89   :  { %1790 = vmatprep.subr.bf16.mxu0 %v1789_v54  ;;  %1798 = vmatpush3.bf16.msra.mxu1 %v2356_v62 }
  0x8a   :  { %1799 = vmatprep.subr.bf16.mxu1 %v2189_v50 }
  0x8c   :  { %1792 = vmatpush3.bf16.msra.mxu0 %v1789_v54 }
  0x8d   :  { %1801 = vmatpush3.bf16.msra.mxu1 %v2360_v1  ;;  %1842 = vmatprep.subr.bf16.mxu0 %v1841_v9 }
  0x8e   :  { %1802 = vmatprep.subr.bf16.mxu1 %v2189_v50 }
  0x8f   :  { %1486 = vmatmul.mubr.msk.f32.vlgmr.msra.gmra.mrb[0].mxu0 %vm165_vm1, %v146_v57 }
  0x90   :  { %1488 = vmatprep.mubr.msk.f32.mxu0 %vm165_vm1, %v143_v58  ;;  %1844 = vmatpush3.bf16.msra.mxu0 %v1841_v9 }
  0x91   :  { %1804 = vmatpush3.bf16.msra.mxu1 %v2364_v4  ;;  %1846 = vmatprep.subr.bf16.mxu0 %v1845_v14 }
  0x92   :  { %1805 = vmatprep.subr.bf16.mxu1 %v2189_v50 }
  0x93   :  { %1489 = vmatmul.mubr.msk.f32.gmra.mrb[2].mxu0 %vm165_vm1, %v147_v59 }
  0x94   :  { %1848 = vmatpush3.bf16.msra.mxu0 %v1845_v14  ;;  %v703_v14 = vld [vmem:[#allocation8 + $0x18] sm:$0xff] }
  0x95   :  { %1807 = vmatpush3.bf16.msra.mxu1 %v2368_v7 }
  0x96   :  { %1808 = vmatprep.subr.bf16.mxu1 %v2189_v50 }
  0x99   :  { %1810 = vmatpush3.bf16.msra.mxu1 %v2372_v10 }
  0x9a   :  { %1811 = vmatprep.subr.bf16.mxu1 %v2189_v50 }
  0x9d   :  { %1813 = vmatpush3.bf16.msra.mxu1 %v2376_v13 }
  0x9e   :  { %1814 = vmatprep.subr.bf16.mxu1 %v2189_v50 }
  0xa1   :  { %1816 = vmatpush3.bf16.msra.mxu1 %v2380_v16 }
  0xa2   :  { %1817 = vmatprep.subr.bf16.mxu1 %v2189_v50 }
 0x155   :  { %v1443_v18 = vpop.f32.mrb[0].mxu1 }
 0x156   :  { %v240_v20 = vpop.f32.mrb[1].mxu1 }
 0x159   :  { %v1446_v22 = vpop.f32.mrb[2].mxu1 }
 0x15a   :  { %v250_v23 = vpop.f32.mrb[3].mxu1 }
 0x162   :  { %v1487_v27 = vpop.f32.mrb[0].mxu0 }
 0x163   :  { %v1985_v28 = vadd.f32 %v1487_v27, %v1443_v18  ;;  %v439_v29 = vpop.f32.mrb[1].mxu0  ;;  %v722_v18 = vld [vmem:[#allocation8 + $0xa8] sm:$0xff] }
 0x164   :  { %v1986_v30 = vadd.f32 %v439_v29, %v240_v20  ;;  %v1849_v19 = vpack.c.bf16 %v722_v18, %v721_v15  ;;  %v723_v20 = vld [vmem:[#allocation8 + $0xb0] sm:$0xff]  ;;  %v726_v27 = vld [vmem:[#allocation8 + $0xc8] sm:$0xff] }
 0x165   :  { %v468_v31 = vadd.f32 %v1985_v28, %v466_v26  ;;  %v727_v29 = vld [vmem:[#allocation8 + $0xd0] sm:$0xff] }
 0x166   :  { %v467_v32 = vadd.f32 %v1986_v30, %v466_v26  ;;  %v1490_v33 = vpop.f32.mrb[2].mxu0  ;;  %1850 = vmatprep.subr.bf16.mxu0 %v1849_v19  ;;  %v728_v30 = vld [vmem:[#allocation8 + $0xd8] sm:$0xff] }
 0x167   :  { %v1987_v34 = vadd.f32 %v1490_v33, %v1446_v22  ;;  %v449_v35 = vpop.f32.mrb[3].mxu0  ;;  %v2394_v36 = vmax.f32 %v468_v31, 0.0  ;;  %1852 = vmatpush3.bf16.msra.mxu0 %v1849_v19  ;;  %v724_v22 = vld [vmem:[#allocation8 + $0xb8] sm:$0xff]  ;;  %v1861_v31 = vpack.c.bf16 %v728_v30, %v727_v29  ;;  %v730_v33 = vld [vmem:[#allocation8 + $0xe8] sm:$0xff] }
 0x168   :  { %v2396_v37 = vmax.f32 %v467_v32, 0.0  ;;  %v1988_v38 = vadd.f32 %v449_v35, %v250_v23  ;;  %v1853_v23 = vpack.c.bf16 %v724_v22, %v723_v20  ;;  %v729_v32 = vld [vmem:[#allocation8 + $0xe0] sm:$0xff]  ;;  %v731_v35 = vld [vmem:[#allocation8 + $0xf0] sm:$0xff] }
 0x169   :  { %v470_v39 = vadd.f32 %v1987_v34, %v466_v26  ;;  %v555_v52 = vmul.f32 %v2394_v36, %v2394_v36  ;;  %v1865_v34 = vpack.c.bf16 %v730_v33, %v729_v32 }
 0x16a   :  { %v469_v40 = vadd.f32 %v1988_v38, %v466_v26  ;;  %v475_v41 = vadd.f32 %v2394_v36, %v2396_v37  ;;  %v554_v53 = vmul.f32 %v2396_v37, %v2396_v37  ;;  %1854 = vmatprep.subr.bf16.mxu0 %v1853_v23  ;;  %v725_v26 = vld [vmem:[#allocation8 + $0xc0] sm:$0xff]  ;;  %v732_v38 = vld [vmem:[#allocation8 + $0xf8] sm:$0xff] }
 0x16b   :  { %v2402_v43 = vmax.f32 %v470_v39, 0.0  ;;  %1856 = vmatpush3.bf16.msra.mxu0 %v1853_v23  ;;  %v1857_v28 = vpack.c.bf16 %v726_v27, %v725_v26  ;;  %v1869_v39 = vpack.c.bf16 %v732_v38, %v731_v35  ;;  %v704_v23 = vld [vmem:[#allocation8 + $0x20] sm:$0xff]  ;;  %v705_v26 = vld [vmem:[#allocation8 + $0x28] sm:$0xff] }
 0x16c   :  { %v2400_v42 = vmax.f32 %v469_v40, 0.0  ;;  %v558_v57 = vadd.f32 %v555_v52, %v554_v53  ;;  %v700_v40 = vld [vmem:[#allocation8] sm:$0xff] }
 0x16d   :  { %v557_v59 = vmul.f32 %v2402_v43, %v2402_v43  ;;  %1858 = vmatprep.subr.bf16.mxu0 %v1857_v28 }
 0x16e   :  { %v476_v44 = vadd.f32 %v475_v41, %v2400_v42  ;;  %v556_v55 = vmul.f32 %v2400_v42, %v2400_v42  ;;  %v701_v41 = vld [vmem:[#allocation8 + $0x8] sm:$0xff] }
 0x16f   :  { %1860 = vmatpush3.bf16.msra.mxu0 %v1857_v28 }
 0x170   :  { %v477_v45 = vadd.f32 %v476_v44, %v2402_v43  ;;  %v559_v58 = vadd.f32 %v558_v57, %v556_v55  ;;  %1862 = vmatprep.subr.bf16.mxu0 %v1861_v31  ;;  %v1873_v44 = vpack.c.bf16 %v701_v41, %v700_v40  ;;  %v707_v40 = vld [vmem:[#allocation8 + $0x38] sm:$0xff] }
 0x172   :  { %v478_v46 = vrot.slane %v477_v45, 4  ;;  %v560_v60 = vadd.f32 %v559_v58, %v557_v59 }
 0x173   :  { %1864 = vmatpush3.bf16.msra.mxu0 %v1861_v31 }
 0x174   :  { %v479_v47 = vadd.f32 %v478_v46, %v477_v45  ;;  %v561_v61 = vrot.slane %v560_v60, 4  ;;  %1866 = vmatprep.subr.bf16.mxu0 %v1865_v34 }
 0x176   :  { %v480_v48 = vrot.slane %v479_v47, 2  ;;  %v562_v63 = vadd.f32 %v561_v61, %v560_v60  ;;  %v658_v60 = vsub.s32 1, %v2386_v21 }
 0x177   :  { %1868 = vmatpush3.bf16.msra.mxu0 %v1865_v34  ;;  %v1881_v34 = vpack.c.bf16 %v705_v26, %v704_v23  ;;  %v916_v23 = vld [vmem:[#allocation8 + $0x160] sm:$0xff]  ;;  %v917_v26 = vld [vmem:[#allocation8 + $0x168] sm:$0xff] }
 0x178   :  { %v481_v49 = vadd.f32 %v480_v48, %v479_v47  ;;  %v563_v0 = vrot.slane %v562_v63, 2  ;;  %1870 = vmatprep.subr.bf16.mxu0 %v1869_v39 }
 0x17a   :  { %v482_v54 = vrot.slane %v481_v49, 1  ;;  %v564_v2 = vadd.f32 %v563_v0, %v562_v63 }
 0x17b   :  { %1872 = vmatpush3.bf16.msra.mxu0 %v1869_v39  ;;  %v706_v39 = vld [vmem:[#allocation8 + $0x30] sm:$0xff] }
 0x17c   :  { %v483_v56 = vadd.f32 %v482_v54, %v481_v49  ;;  %v565_v3 = vrot.slane %v564_v2, 1  ;;  %1874 = vmatprep.subr.bf16.mxu0 %v1873_v44  ;;  %v1885_v41 = vpack.c.bf16 %v707_v40, %v706_v39 }
 0x17e   :  { %1524 = vmatmul.mubr.f32.vlgmr.msra.gmra.mrb[4].mxu1 %v483_v56  ;;  %v566_v5 = vadd.f32 %v565_v3, %v564_v2  ;;  %v666_v3 = vsub.s32 2, %v2386_v21 }
 0x17f   :  { %1819 = vmatpush3.bf16.msra.mxu1 %v2341_v51  ;;  %1558 = vmatprep.mubr.msk.f32.mxu1 %vm2190_vm3, %v2191_v17 }
 0x180   :  { %1820 = vmatprep.subr.bf16.mxu1 %v2189_v50 }
 0x183   :  { %1822 = vmatpush3.bf16.msra.mxu1 %v2356_v62 }
 0x184   :  { %1823 = vmatprep.subr.bf16.mxu1 %v2189_v50 }
 0x187   :  { %1825 = vmatpush3.bf16.msra.mxu1 %v2360_v1 }
 0x188   :  { %1826 = vmatprep.subr.bf16.mxu1 %v2189_v50 }
 0x18b   :  { %1828 = vmatpush3.bf16.msra.mxu1 %v2364_v4 }
 0x18c   :  { %1829 = vmatprep.subr.bf16.mxu1 %v2189_v50 }
 0x18f   :  { %1831 = vmatpush3.bf16.msra.mxu1 %v2368_v7 }
 0x190   :  { %1832 = vmatprep.subr.bf16.mxu1 %v2189_v50 }
 0x193   :  { %1834 = vmatpush3.bf16.msra.mxu1 %v2372_v10 }
 0x194   :  { %1835 = vmatprep.subr.bf16.mxu1 %v2189_v50 }
 0x197   :  { %1837 = vmatpush3.bf16.msra.mxu1 %v2376_v13 }
 0x198   :  { %1838 = vmatprep.subr.bf16.mxu1 %v2189_v50 }
 0x19b   :  { %1840 = vmatpush3.bf16.msra.mxu1 %v2380_v16 }
 0x19c   :  { %1937 = vmatprep.subr.bf16.mxu1 %v2189_v50 }
 0x19e   :  { %1559 = vmatmul.mubr.f32.vlgmr.msra.gmra.mrb[6].mxu1 %v566_v5 }
 0x19f   :  { %1939 = vmatpush3.bf16.msra.mxu1 %v2341_v51  ;;  %1707 = vmatprep.mubr.msk.f32.mxu1 %vm2190_vm3, %v2191_v17 }
 0x1a0   :  { %1940 = vmatprep.subr.bf16.mxu1 %v2189_v50 }
 0x1a3   :  { %1942 = vmatpush3.bf16.msra.mxu1 %v2356_v62 }
 0x1a4   :  { %1943 = vmatprep.subr.bf16.mxu1 %v2189_v50 }
 0x1a7   :  { %1945 = vmatpush3.bf16.msra.mxu1 %v2360_v1 }
 0x1a8   :  { %1946 = vmatprep.subr.bf16.mxu1 %v2189_v50 }
 0x1ab   :  { %1948 = vmatpush3.bf16.msra.mxu1 %v2364_v4 }
 0x1ac   :  { %1949 = vmatprep.subr.bf16.mxu1 %v2189_v50 }
 0x1af   :  { %1951 = vmatpush3.bf16.msra.mxu1 %v2368_v7 }
 0x1b0   :  { %1952 = vmatprep.subr.bf16.mxu1 %v2189_v50 }
 0x1b3   :  { %1954 = vmatpush3.bf16.msra.mxu1 %v2372_v10 }
 0x1b4   :  { %1955 = vmatprep.subr.bf16.mxu1 %v2189_v50 }
 0x1b7   :  { %1957 = vmatpush3.bf16.msra.mxu1 %v2376_v13 }
 0x1b8   :  { %1958 = vmatprep.subr.bf16.mxu1 %v2189_v50 }
 0x1bb   :  { %1960 = vmatpush3.bf16.msra.mxu1 %v2380_v16 }
 0x1bc   :  { %1961 = vmatprep.subr.bf16.mxu1 %v2189_v50 }
 0x251   :  { %v550_v45 = vpop.f32.mrb[4].mxu1 }
 0x252   :  { %v1525_v46 = vpop.f32.mrb[5].mxu1  ;;  %v637_v47 = vmul.f32 0.001953125, %v550_v45  ;;  %v709_v45 = vld [vmem:[#allocation8 + $0x48] sm:$0xff] }
 0x254   :  { %v639_v49 = vmul.f32 %v637_v47, %v637_v47 }
 0x271   :  { %v633_v48 = vpop.f32.mrb[6].mxu1 }
 0x272   :  { %v638_v52 = vmul.f32 0.001953125, %v633_v48  ;;  %v1560_v53 = vpop.f32.mrb[7].mxu1  ;;  %v711_v48 = vld [vmem:[#allocation8 + $0x58] sm:$0xff] }
 0x273   :  { %v713_v53 = vld [vmem:[#allocation8 + $0x68] sm:$0xff] }
 0x274   :  { %v640_v54 = vsub.f32 %v638_v52, %v639_v49  ;;  %v712_v52 = vld [vmem:[#allocation8 + $0x60] sm:$0xff] }
 0x276   :  { %v641_v55 = vmax.f32 %v640_v54, 0.0  ;;  %v1897_v54 = vpack.c.bf16 %v713_v53, %v712_v52 }
 0x278   :  { %v642_v56 = vadd.f32 1e-05, %v641_v55  ;;  %v714_v55 = vld [vmem:[#allocation8 + $0x70] sm:$0xff] }
 0x27a   :  { %2013 = vrsqrt.f32 %v642_v56  ;;  %v715_v56 = vld [vmem:[#allocation8 + $0x78] sm:$0xff] }
 0x284   :  { %v2014_v57 = vpop.eup %2013 }
 0x285   :  { %v645_v58 = vrot.slane %v2014_v57, 7  ;;  %v1901_v57 = vpack.c.bf16 %v715_v56, %v714_v55 }
 0x287   :  { %v647_v59 = vmul.f32 %v645_v58, %v2389_v25  ;;  %v904_v58 = vld [vmem:[#allocation8 + $0x100] sm:$0xff] }
 0x289   :  { %v649_v61 = vrot.slane %v647_v59, 1  ;;  %v659_v0 = vrot.slane %v647_v59, %v658_v60  ;;  %v905_v59 = vld [vmem:[#allocation8 + $0x108] sm:$0xff] }
 0x28b   :  { %v651_v63 = vmul.f32 %v649_v61, %v637_v47  ;;  %v660_v6 = vmul.f32 %v659_v0, %v2396_v37  ;;  %v661_v9 = vmul.f32 %v659_v0, %v2394_v36  ;;  %v662_v11 = vmul.f32 %v659_v0, %v2400_v42  ;;  %v710_v47 = vld [vmem:[#allocation8 + $0x50] sm:$0xff] }
 0x28c   :  { %v663_v15 = vmul.f32 %v659_v0, %v2402_v43  ;;  %v1893_v49 = vpack.c.bf16 %v711_v48, %v710_v47  ;;  %v1905_v61 = vpack.c.bf16 %v905_v59, %v904_v58  ;;  %v907_v0 = vld [vmem:[#allocation8 + $0x118] sm:$0xff] }
 0x28d   :  { %v653_v2 = vrot.slane %v651_v63, 6  ;;  %v906_v63 = vld [vmem:[#allocation8 + $0x110] sm:$0xff] }
 0x28f   :  { %v655_v5 = vsub.f32 %v2389_v25, %v653_v2  ;;  %v1877_v25 = vpack.c.bf16 %v703_v14, %v702_v12  ;;  %v1909_v2 = vpack.c.bf16 %v907_v0, %v906_v63  ;;  %v912_v14 = vld [vmem:[#allocation8 + $0x140] sm:$0xff] }
 0x291   :  { %v667_v8 = vrot.slane %v655_v5, %v666_v3  ;;  %v908_v5 = vld [vmem:[#allocation8 + $0x120] sm:$0xff] }
 0x293   :  { %v668_v18 = vadd.f32 %v667_v8, %v660_v6  ;;  %v2462_v19 = vadd.f32 %v667_v8, %v661_v9  ;;  %v2464_v20 = vadd.f32 %v667_v8, %v662_v11  ;;  %v2466_v22 = vadd.f32 %v667_v8, %v663_v15  ;;  %v909_v6 = vld [vmem:[#allocation8 + $0x128] sm:$0xff]  ;;  %v910_v9 = vld [vmem:[#allocation8 + $0x130] sm:$0xff]  ;;  %v911_v11 = vld [vmem:[#allocation8 + $0x138] sm:$0xff] }
 0x294   :  { %v1913_v8 = vpack.c.bf16 %v909_v6, %v908_v5  ;;  %v1917_v12 = vpack.c.bf16 %v911_v11, %v910_v9  ;;  %v913_v15 = vld [vmem:[#allocation8 + $0x148] sm:$0xff] }
 0x295   :  { %1593 = vmatprep.mubr.f32.mxu0 %v668_v18  ;;  %v676_v37 = vrot.slane %v668_v18, 7  ;;  %v677_v36 = vrot.slane %v2462_v19, 7  ;;  %v679_v42 = vrot.slane %v2464_v20, 7  ;;  %v680_v27 = vrot.slane %v2466_v22, 7 }
 0x296   :  { %1594 = vmatmul.mubr.f32.vlgmr.msra.gmra.mrb[4].mxu0 %v2462_v19  ;;  %v688_v43 = vrot.slane %v668_v18, 1  ;;  %v689_v28 = vrot.slane %v2462_v19, 1  ;;  %v691_v29 = vrot.slane %v2464_v20, 1  ;;  %v692_v30 = vrot.slane %v2466_v22, 1 }
 0x297   :  { %1876 = vmatpush3.bf16.msra.mxu0 %v1873_v44  ;;  %1596 = vmatprep.mubr.f32.mxu0 %v2464_v20  ;;  %v678_v31 = vsel %vm126_vm0, %v676_v37, %v677_v36  ;;  %v681_v32 = vsel %vm126_vm0, %v679_v42, %v680_v27  ;;  %v708_v44 = vld [vmem:[#allocation8 + $0x40] sm:$0xff]  ;;  %v1921_v18 = vpack.c.bf16 %v913_v15, %v912_v14  ;;  %v914_v20 = vld [vmem:[#allocation8 + $0x150] sm:$0xff]  ;;  %v919_v27 = vld [vmem:[#allocation8 + $0x178] sm:$0xff] }
 0x298   :  { %1878 = vmatprep.subr.bf16.mxu0 %v1877_v25  ;;  %v690_v35 = vsel %vm137_vm2, %v688_v43, %v689_v28  ;;  %v2489_v38 = vsel %vm137_vm2, %v691_v29, %v692_v30  ;;  %v1889_v46 = vpack.c.bf16 %v709_v45, %v708_v44  ;;  %v1929_v36 = vpack.c.bf16 %v917_v26, %v916_v23  ;;  %v2503_v29 = vld [vmem:[#allocation10] sm:$0x7] }
 0x29a   :  { %1597 = vmatmul.mubr.f32.gmra.mrb[6].mxu0 %v2466_v22 }
 0x29b   :  { %1880 = vmatpush3.bf16.msra.mxu0 %v1877_v25  ;;  %1631 = vmatprep.mubr.msk.f32.mxu0 %vm2479_vm4, %v676_v37  ;;  %v915_v25 = vld [vmem:[#allocation8 + $0x158] sm:$0xff] }
 0x29c   :  { %1882 = vmatprep.subr.bf16.mxu0 %v1881_v34  ;;  %v1925_v37 = vpack.c.bf16 %v915_v25, %v914_v20 }
 0x29f   :  { %1884 = vmatpush3.bf16.msra.mxu0 %v1881_v34 }
 0x2a0   :  { %1886 = vmatprep.subr.bf16.mxu0 %v1885_v41 }
 0x2a3   :  { %1888 = vmatpush3.bf16.msra.mxu0 %v1885_v41 }
 0x2a4   :  { %1890 = vmatprep.subr.bf16.mxu0 %v1889_v46 }
 0x2a7   :  { %1892 = vmatpush3.bf16.msra.mxu0 %v1889_v46 }
 0x2a8   :  { %1894 = vmatprep.subr.bf16.mxu0 %v1893_v49 }
 0x2ab   :  { %1896 = vmatpush3.bf16.msra.mxu0 %v1893_v49 }
 0x2ac   :  { %1898 = vmatprep.subr.bf16.mxu0 %v1897_v54 }
 0x2af   :  { %1900 = vmatpush3.bf16.msra.mxu0 %v1897_v54 }
 0x2b0   :  { %1902 = vmatprep.subr.bf16.mxu0 %v1901_v57 }
 0x2b3   :  { %1904 = vmatpush3.bf16.msra.mxu0 %v1901_v57 }
 0x2b4   :  { %1906 = vmatprep.subr.bf16.mxu0 %v1905_v61 }
 0x2b6   :  { %1632 = vmatmul.mubr.f32.vlgmr.msra.gmra.mrb[4].mxu0 %v678_v31  ;;  %v1013_v31 = vrot.slane %v2503_v29, %v465_v24 }
 0x2b7   :  { %1634 = vmatprep.mubr.msk.f32.mxu0 %vm2479_vm4, %v679_v42  ;;  %1908 = vmatpush3.bf16.msra.mxu0 %v1905_v61  ;;  %v918_v42 = vld [vmem:[#allocation8 + $0x170] sm:$0xff] }
 0x2b8   :  { %1910 = vmatprep.subr.bf16.mxu0 %v1909_v2  ;;  %v1933_v43 = vpack.c.bf16 %v919_v27, %v918_v42 }
 0x2ba   :  { %1635 = vmatmul.mubr.f32.gmra.mrb[6].mxu0 %v681_v32 }
 0x2bb   :  { %1912 = vmatpush3.bf16.msra.mxu0 %v1909_v2  ;;  %1669 = vmatprep.mubr.f32.mxu0 %v690_v35 }
 0x2bc   :  { %1914 = vmatprep.subr.bf16.mxu0 %v1913_v8 }
 0x2bf   :  { %1916 = vmatpush3.bf16.msra.mxu0 %v1913_v8 }
 0x2c0   :  { %1918 = vmatprep.subr.bf16.mxu0 %v1917_v12 }
 0x2c3   :  { %1920 = vmatpush3.bf16.msra.mxu0 %v1917_v12 }
 0x2c4   :  { %1922 = vmatprep.subr.bf16.mxu0 %v1921_v18 }
 0x2c7   :  { %1924 = vmatpush3.bf16.msra.mxu0 %v1921_v18 }
 0x2c8   :  { %1926 = vmatprep.subr.bf16.mxu0 %v1925_v37 }
 0x2cb   :  { %1928 = vmatpush3.bf16.msra.mxu0 %v1925_v37 }
 0x2cc   :  { %1930 = vmatprep.subr.bf16.mxu0 %v1929_v36 }
 0x2cf   :  { %1932 = vmatpush3.bf16.msra.mxu0 %v1929_v36 }
 0x2d0   :  { %1934 = vmatprep.subr.bf16.mxu0 %v1933_v43 }
 0x2d3   :  { %1936 = vmatpush3.bf16.msra.mxu0 %v1933_v43 }
 0x2d6   :  { %1670 = vmatmul.mubr.msk.f32.vlgmr.msra.gmra.mrb[4].mxu0 %vm137_vm2, %v689_v28 }
 0x2d7   :  { %1672 = vmatprep.mubr.f32.mxu0 %v2489_v38 }
 0x2da   :  { %1673 = vmatmul.mubr.msk.f32.gmra.mrb[6].mxu0 %vm137_vm2, %v692_v30 }
 0x3a9   :  { %v1671_v32 = vpop.f32.mrb[4].mxu0 }
 0x3aa   :  { %v1015_v33 = vadd.f32 %v1671_v32, %v1013_v31  ;;  %v986_v34 = vpop.f32.mrb[5].mxu0 }
 0x3ab   :  { %v1014_v35 = vadd.f32 %v1013_v31, %v986_v34 }
 0x3ac   :  { %v2508_v39 = vmax.f32 %v1015_v33, 0.0 }
 0x3ad   :  { %v2510_v19 = vmax.f32 %v1014_v35, 0.0  ;;  %v1674_v28 = vpop.f32.mrb[6].mxu0 }
 0x3ae   :  { %v996_v38 = vpop.f32.mrb[7].mxu0  ;;  %v1017_v40 = vadd.f32 %v1674_v28, %v1013_v31  ;;  %v1102_v52 = vmul.f32 %v2508_v39, %v2508_v39 }
 0x3af   :  { %v1016_v22 = vadd.f32 %v1013_v31, %v996_v38  ;;  %v1022_v30 = vadd.f32 %v2508_v39, %v2510_v19  ;;  %v1101_v53 = vmul.f32 %v2510_v19, %v2510_v19 }
 0x3b0   :  { %v2516_v44 = vmax.f32 %v1017_v40, 0.0 }
 0x3b1   :  { %v2514_v41 = vmax.f32 %v1016_v22, 0.0  ;;  %v1105_v57 = vadd.f32 %v1102_v52, %v1101_v53 }
 0x3b2   :  { %v1104_v59 = vmul.f32 %v2516_v44, %v2516_v44 }
 0x3b3   :  { %v1023_v24 = vadd.f32 %v1022_v30, %v2514_v41  ;;  %v1103_v55 = vmul.f32 %v2514_v41, %v2514_v41 }
 0x3b5   :  { %v1024_v45 = vadd.f32 %v1023_v24, %v2516_v44  ;;  %v1106_v58 = vadd.f32 %v1105_v57, %v1103_v55 }
 0x3b7   :  { %v1025_v46 = vrot.slane %v1024_v45, 4  ;;  %v1107_v61 = vadd.f32 %v1106_v58, %v1104_v59 }
 0x3b9   :  { %v1026_v47 = vadd.f32 %v1025_v46, %v1024_v45  ;;  %v1108_v63 = vrot.slane %v1107_v61, 4 }
 0x3bb   :  { %v1027_v48 = vrot.slane %v1026_v47, 2 }
 0x3bd   :  { %v1028_v49 = vadd.f32 %v1027_v48, %v1026_v47 }
 0x3bf   :  { %v1029_v54 = vrot.slane %v1028_v49, 1 }
 0x3c1   :  { %v1030_v56 = vadd.f32 %v1029_v54, %v1028_v49 }
 0x3c3   :  { %1708 = vmatmul.mubr.f32.vlgmr.msra.gmra.mrb[8].mxu1 %v1030_v56 }
 0x3c4   :  { %1963 = vmatpush3.bf16.msra.mxu1 %v2341_v51  ;;  %1742 = vmatprep.mubr.msk.f32.mxu1 %vm2190_vm3, %v2191_v17  ;;  %v1109_v51 = vadd.f32 %v1108_v63, %v1107_v61 }
 0x3c5   :  { %1964 = vmatprep.subr.bf16.mxu1 %v2189_v50 }
 0x3c6   :  { %v1110_v17 = vrot.slane %v1109_v51, 2 }
 0x3c8   :  { %1966 = vmatpush3.bf16.msra.mxu1 %v2356_v62  ;;  %v1111_v62 = vadd.f32 %v1110_v17, %v1109_v51 }
 0x3c9   :  { %1967 = vmatprep.subr.bf16.mxu1 %v2189_v50 }
 0x3cc   :  { %1969 = vmatpush3.bf16.msra.mxu1 %v2360_v1  ;;  %v1112_v1 = vrot.slane %v1111_v62, 1 }
 0x3cd   :  { %1970 = vmatprep.subr.bf16.mxu1 %v2189_v50 }
 0x3d0   :  { %1972 = vmatpush3.bf16.msra.mxu1 %v2364_v4  ;;  %v1113_v4 = vadd.f32 %v1112_v1, %v1111_v62 }
 0x3d1   :  { %1973 = vmatprep.subr.bf16.mxu1 %v2189_v50 }
 0x3d4   :  { %1975 = vmatpush3.bf16.msra.mxu1 %v2368_v7 }
 0x3d5   :  { %1976 = vmatprep.subr.bf16.mxu1 %v2189_v50 }
 0x3d8   :  { %1978 = vmatpush3.bf16.msra.mxu1 %v2372_v10 }
 0x3d9   :  { %1979 = vmatprep.subr.bf16.mxu1 %v2189_v50 }
 0x3dc   :  { %1981 = vmatpush3.bf16.msra.mxu1 %v2376_v13 }
 0x3dd   :  { %1982 = vmatprep.subr.bf16.mxu1 %v2189_v50 }
 0x3e0   :  { %1984 = vmatpush3.bf16.msra.mxu1 %v2380_v16 }
 0x3e3   :  { %1743 = vmatmul.mubr.f32.vlgmr.msra.gmra.mrb[10].mxu1 %v1113_v4 }
 0x496   :  { %v1097_v0 = vpop.f32.mrb[8].mxu1 }
 0x497   :  { %v1709_v2 = vpop.f32.mrb[9].mxu1  ;;  %v1184_v7 = vmul.f32 0.001953125, %v1097_v0 }
 0x499   :  { %v1186_v6 = vmul.f32 %v1184_v7, %v1184_v7 }
 0x4b6   :  { %v1180_v5 = vpop.f32.mrb[10].mxu1 }
 0x4b7   :  { %v1185_v8 = vmul.f32 0.001953125, %v1180_v5  ;;  %v1744_v9 = vpop.f32.mrb[11].mxu1 }
 0x4b9   :  { %v1187_v10 = vsub.f32 %v1185_v8, %v1186_v6 }
 0x4bb   :  { %v1188_v11 = vmax.f32 %v1187_v10, 0.0 }
 0x4bd   :  { %v1189_v12 = vadd.f32 1e-05, %v1188_v11 }
 0x4bf   :  { %2015 = vrsqrt.f32 %v1189_v12 }
 0x4c9   :  { %v2016_v14 = vpop.eup %2015 }
 0x4ca   :  { %v1192_v13 = vrot.slane %v2016_v14, 7 }
 0x4cc   :  { %v1194_v50 = vmul.f32 %v1192_v13, %v2503_v29 }
 0x4ce   :  { %v1196_v15 = vrot.slane %v1194_v50, 1  ;;  %v1206_v16 = vrot.slane %v1194_v50, %v658_v60 }
 0x4d0   :  { %v1198_v18 = vmul.f32 %v1196_v15, %v1184_v7  ;;  %v1207_v37 = vmul.f32 %v1206_v16, %v2510_v19  ;;  %v1208_v26 = vmul.f32 %v1206_v16, %v2508_v39  ;;  %v1209_v36 = vmul.f32 %v1206_v16, %v2514_v41 }
 0x4d1   :  { %v1210_v42 = vmul.f32 %v1206_v16, %v2516_v44 }
 0x4d2   :  { %v1200_v20 = vrot.slane %v1198_v18, 6 }
 0x4d4   :  { %v1202_v25 = vsub.f32 %v2503_v29, %v1200_v20 }
 0x4d6   :  { %v1214_v23 = vrot.slane %v1202_v25, %v666_v3 }
 0x4d8   :  { %v1215_v27 = vadd.f32 %v1214_v23, %v1207_v37  ;;  %v1216_v43 = vadd.f32 %v1214_v23, %v1208_v26  ;;  %v1217_v31 = vadd.f32 %v1214_v23, %v1209_v36  ;;  %v1218_v60 = vadd.f32 %v1214_v23, %v1210_v42 }
 0x4da   :  { %1219 = vst [vmem:[#allocation13] sm:$0xff] %v1215_v27  ;;  %1220 = vst [vmem:[#allocation13 + $0x8] sm:$0xff] %v1216_v43 }
 0x4db   :  { %1221 = vst [vmem:[#allocation13 + $0x10] sm:$0xff] %v1217_v31  ;;  %1222 = vst [vmem:[#allocation13 + $0x18] sm:$0xff] %v1218_v60 }
 0x4dc   :  { %2160 = shalt.err (!%p2157_p10)
}
 0x4dd   :  { %s2161_s22 = scalar_lea.hbm %s2576_s6, 512 }
 0x4de   :  { %p2162_p11 = scmp.ne.s32.totalorder %s2576_s6, %s2161_s22  ;;  %p2165_p12 = scmp.lt.u32.totalorder %s2161_s22, %s2576_s6 }
 0x4e0   :  { %p2167_p13 = pnand %p2165_p12, %p2162_p11 }
 0x4e2   :  { %2170 = shalt.err (!%p2167_p13)
}
 0x4e3   :  { %1234 = dma.vmem_to_hbm [thread:$0]  %s1229_s20, 512, %s2576_s6, [#allocation4], %s2183_s9, %s2183_s9, %s2184_s10  }
 0x4e4   :  { %2179 = dma.done.wait [#allocation4], 512  }
 0x4e5   :  { %2180 = vsyncadd [#allocation4], 4294966784 }
 0x4e6   :  { %1238 = vsyncpa [#allocation3], 1 }
 0x4e7   :  { %1239 = vsyncpa [#allocation6], 1 }
 0x4e8   :  { %1240 = vsyncpa [#allocation9], 1 }
 0x4e9   :  { %1241 = vsyncpa [#allocation12], 1 }
 0x4ea   :  { %1242 = vsyncpa [#allocation4], 1 }

</bundles_post_ra>
